<compile_context>
chip_gen: v7x
topology: tpu7x:2x2x1
jax: 0.10.0
libtpu: 0.0.40
codegen_flags: <defaults>
</compile_context>

<pallas_src>
import functools

import jax
import jax.numpy as jnp
from jax import lax
from jax.experimental import pallas as pl
from jax.experimental.pallas import tpu as pltpu


# ----------------------------- Pallas kernel --------------------------------

def _shuffle_conv_kernel(x_ref, w_ref, b_ref, o_ref, patch_ref, *,
                         B, KH, KW, Cpad, Wr, L, lpad, ph_l, pw_l):
    """One grid step: build im2col patch^T for B samples, then B small GEMMs."""
    # x_ref:     (B, Cpad, Lp)   flat (row-major Hr*Wr) shuffled images, zero padded
    #                            (lpad leading / rpad trailing lanes, Cpad >= Cin rows)
    # w_ref:     (Cout, Kp)      Kp = KH*KW*Cpad, rows ordered (kh, kw, c)
    # b_ref:     (Cout, 1)
    # o_ref:     (B, Cout, L)    L = Hr*Wr (flattened NCHW output, lane dense)
    # patch_ref: (B, Kp, L)      VMEM scratch with patch^T per sample
    #
    # patch[b, (kh*KW+kw)*Cpad + c, h*Wr + w] = x_pad[b, c, h+kh-ph_l, w+kw-pw_l]
    # Each (kh, kw) tap is a single static lane slice of the flat padded image; the
    # column-wrap positions (w + dw outside [0, Wr)) are zeroed with a VPU mask and
    # the row-out-of-range positions land in the zero lane padding.
    w_pos = lax.broadcasted_iota(jnp.int32, (1, Cpad, L), 2) % Wr
    for kw in range(KW):
        dw = kw - pw_l
        if dw > 0:
            keep = w_pos < (Wr - dw)
        elif dw < 0:
            keep = w_pos >= (-dw)
        else:
            keep = None
        for kh in range(KH):
            dh = kh - ph_l
            start = lpad + dh * Wr + dw                 # static python int, >= 0
            vals = x_ref[:, :, start:start + L]         # (B, Cpad, L): all samples
            if keep is not None:
                vals = jnp.where(keep, vals, jnp.zeros_like(vals))
            k0 = (kh * KW + kw) * Cpad                  # multiple of 8 -> unmasked slab
            patch_ref[:, k0:k0 + Cpad, :] = vals

    # MXU GEMMs: operands stay in the model dtype (fast bf16 path), f32 accumulation.
    w_mat = w_ref[...]
    bias = b_ref[...].astype(jnp.float32)               # (Cout, 1) broadcast over lanes
    for b in range(B):                                   # B is a small static int
        acc = jnp.dot(w_mat, patch_ref[b], preferred_element_type=jnp.float32)
        o_ref[b, :, :] = (acc + bias).astype(o_ref.dtype)


# ------------------------------ ShuffleConv ----------------------------------

def _pick_batch_block(N, per_sample_vmem_bytes):
    """Samples per grid step: amortize grid/DMA overhead, stay inside VMEM,
    keep >= 2 parallel grid steps so both v7x TensorCores get work."""
    budget = 12 * 1024 * 1024            # per-step working-set budget (safe on all gens)
    B = max(1, min(N, budget // max(per_sample_vmem_bytes, 1), 16))
    if N >= 2:
        B = min(B, (N + 1) // 2)         # ensure at least 2 grid steps
    return int(B)


@functools.partial(jax.jit, static_argnames=("upscale_factor",))
def shuffle_conv_forward(x, weight, bias, upscale_factor=2):
    """ShuffleConv.forward.  x: (N, Cin, H, W) -> (N, Cout, H*r, W*r)."""
    N, Cin, H, W = x.shape
    Cout, _, KH, KW = weight.shape
    r = upscale_factor
    Hr, Wr = H * r, W * r
    L = Hr * Wr
    Cpad = -(-Cin // 8) * 8              # 8-aligned channel slabs (unmasked patch stores)
    Kp = KH * KW * Cpad

    # PyTorch padding='same' (stride 1): left = (k-1)//2, right = (k-1) - left.
    ph_l = (KH - 1) // 2
    ph_r = (KH - 1) - ph_l
    pw_l = (KW - 1) // 2
    pw_r = (KW - 1) - pw_l

    # Flat lane padding so every (kh, kw) tap is a static in-bounds lane slice.
    # (No 128 round-up: the input block's last dim equals the full array dim.)
    lpad = ph_l * Wr + pw_l
    rpad = ph_r * Wr + pw_r
    Lp = lpad + L + rpad

    # cat([X]*r^2, dim=1) + pixel_shuffle == channel-phase shuffle
    #   out[c, r*h+i, r*w+j] = X[(c*r^2 + i*r + j) mod Cin, h, w]
    # built as a broadcast (no materialized concat) + the exact index permutation;
    # allow_input_fusion below lets XLA fuse this producer into the input fetch.
    x_cat = jnp.broadcast_to(x[:, None], (N, r * r, Cin, H, W)).reshape(
        N, r * r * Cin, H, W)
    x_ps = x_cat.reshape(N, Cin, r, r, H, W).transpose(0, 1, 4, 2, 5, 3)
    x_flat = x_ps.reshape(N, Cin, L)

    itemsize = jnp.dtype(x.dtype).itemsize
    per_sample = (2 * Cpad * Lp + 2 * Cout * L + Kp * L) * itemsize
    B = _pick_batch_block(N, per_sample)
    Npad = pl.cdiv(N, B) * B

    x_pad = jnp.pad(x_flat, ((0, Npad - N), (0, Cpad - Cin), (lpad, rpad)))

    # weight OIHW -> (Cout, Kp), rows ordered (kh, kw, c), channels zero-padded to Cpad.
    w2 = jnp.transpose(weight, (0, 2, 3, 1))
    w2 = jnp.pad(w2, ((0, 0), (0, 0), (0, 0), (0, Cpad - Cin)))
    w2 = w2.reshape(Cout, Kp).astype(x.dtype)
    b2 = bias.reshape(Cout, 1)

    kernel = functools.partial(
        _shuffle_conv_kernel, B=B, KH=KH, KW=KW, Cpad=Cpad, Wr=Wr, L=L,
        lpad=lpad, ph_l=ph_l, pw_l=pw_l)

    # Explicit VMEM limit: raises v5e's 16 MiB scoped default, stays inside v7x's
    # 64 MiB physical VMEM (the B selection keeps the working set far below it).
    vmem_est = B * per_sample + Cout * (Kp + 1) * itemsize + (2 << 20)
    vmem_limit = int(min(64 * 1024 * 1024, max(32 * 1024 * 1024, 2 * vmem_est)))

    out_flat = pl.pallas_call(
        kernel,
        out_shape=jax.ShapeDtypeStruct((Npad, Cout, L), x.dtype),
        grid_spec=pltpu.PrefetchScalarGridSpec(
            num_scalar_prefetch=0,
            grid=(Npad // B,),
            in_specs=[
                pl.BlockSpec((B, Cpad, Lp), lambda n: (n, 0, 0)),
                pl.BlockSpec((Cout, Kp), lambda n: (0, 0)),
                pl.BlockSpec((Cout, 1), lambda n: (0, 0)),
            ],
            out_specs=pl.BlockSpec((B, Cout, L), lambda n: (n, 0, 0)),
            scratch_shapes=[pltpu.VMEM((B, Kp, L), x.dtype)],
        ),
        compiler_params=pltpu.CompilerParams(
            dimension_semantics=("parallel",),
            allow_input_fusion=[True, False, False],
            vmem_limit_bytes=vmem_limit,
        ),
    )(x_pad, w2, b2)

    # (Npad, Cout, Hr*Wr) -> (N, Cout, Hr, Wr): slice + free row-major reshape.
    return out_flat[:N].reshape(N, Cout, Hr, Wr)


# ---------------------------------- main --------------------------------------

if __name__ == "__main__":
    in_channels, out_channels, kernel_size, upscale = 4, 8, 3, 2
    N, H, W = 2, 16, 16

    key = jax.random.PRNGKey(0)
    kx, kw_, kb = jax.random.split(key, 3)

    x = jax.random.normal(kx, (N, in_channels, H, W), jnp.float32)

    # Deterministic Conv2d-like init (kaiming-uniform bounds as in nn.Conv2d).
    fan_in = in_channels * kernel_size * kernel_size
    bound = 1.0 / (fan_in ** 0.5)
    weight = jax.random.uniform(
        kw_, (out_channels, in_channels, kernel_size, kernel_size),
        jnp.float32, -bound, bound)                              # OIHW
    bias = jax.random.uniform(kb, (out_channels,), jnp.float32, -bound, bound)

    out = shuffle_conv_forward(x, weight, bias, upscale_factor=upscale)
    out = jax.block_until_ready(out)
    assert out.shape == (N, out_channels, H * upscale, W * upscale), out.shape

    # Reference: literal cat + pixel_shuffle (torch semantics) then XLA conv.
    r = upscale
    x_cat = jnp.concatenate([x] * (r * r), axis=1)
    x_ps = x_cat.reshape(N, in_channels, r, r, H, W).transpose(0, 1, 4, 2, 5, 3)
    x_ps = x_ps.reshape(N, in_channels, H * r, W * r)
    p_l = (kernel_size - 1) // 2
    p_r = (kernel_size - 1) - p_l
    ref = lax.conv_general_dilated(
        x_ps, weight, window_strides=(1, 1),
        padding=[(p_l, p_r), (p_l, p_r)],
        dimension_numbers=("NCHW", "OIHW", "NCHW"),
    ) + bias.reshape(1, out_channels, 1, 1)
    err = float(jnp.max(jnp.abs(out - ref)))
    assert jnp.allclose(out, ref, atol=1e-4, rtol=1e-4), err

    print("KERNEL_OK")
</pallas_src>

<mosaic_0001>
module attributes {stable_mosaic.version = 11 : i64} {
  func.func @_shuffle_conv_kernel(%arg0: i32, %arg1: memref<1x8x1090xf32, #tpu.memory_space<vmem>>, %arg2: memref<8x72xf32, #tpu.memory_space<vmem>>, %arg3: memref<8x1xf32, #tpu.memory_space<vmem>>, %arg4: memref<1x8x1024xf32, #tpu.memory_space<vmem>>, %arg5: memref<1x72x1024xf32, #tpu.memory_space<vmem>>) attributes {dimension_semantics = [#tpu.dimension_semantics<parallel>], iteration_bounds = array<i64: 2>, scalar_prefetch = 0 : i64, scratch_operands = 1 : i64, tpu.core_type = #tpu.core_type<tc>, window_params = [{transform_indices = @transform_0, window_bounds = array<i64: 1, 8, 1090>}, {pipeline_mode = #tpu.pipeline_mode<synchronous>, transform_indices = @transform_1, window_bounds = array<i64: 8, 72>}, {pipeline_mode = #tpu.pipeline_mode<synchronous>, transform_indices = @transform_2, window_bounds = array<i64: 8, 1>}, {transform_indices = @transform_3, window_bounds = array<i64: 1, 8, 1024>}]} {
    %0 = tpu.iota {dimensions = array<i32: 2>} : vector<1x8x1024xi32>
    %c32_i32 = arith.constant 32 : i32
    %c0_i32 = arith.constant 0 : i32
    %1 = arith.cmpi eq, %c32_i32, %c0_i32 : i32
    %c1_i32 = arith.constant 1 : i32
    %2 = arith.select %1, %c1_i32, %c32_i32 : i32
    %3 = vector.broadcast %2 : i32 to vector<1x8x1024xi32>
    %4 = arith.remsi %0, %3 : vector<1x8x1024xi32>
    %c0_i32_0 = arith.constant 0 : i32
    %5 = vector.broadcast %c0_i32_0 : i32 to vector<1x8x1024xi32>
    %6 = arith.cmpi ne, %4, %5 : vector<1x8x1024xi32>
    %c0_i32_1 = arith.constant 0 : i32
    %7 = vector.broadcast %c0_i32_1 : i32 to vector<1x8x1024xi32>
    %8 = arith.cmpi slt, %4, %7 : vector<1x8x1024xi32>
    %c0_i32_2 = arith.constant 0 : i32
    %9 = arith.cmpi slt, %2, %c0_i32_2 : i32
    %10 = vector.broadcast %9 : i1 to vector<1x8x1024xi1>
    %11 = vector.broadcast %10 : vector<1x8x1024xi1> to vector<1x8x1024xi1>
    %12 = arith.xori %8, %11 : vector<1x8x1024xi1>
    %13 = arith.andi %12, %6 : vector<1x8x1024xi1>
    %14 = vector.broadcast %2 : i32 to vector<1x8x1024xi32>
    %15 = arith.addi %4, %14 : vector<1x8x1024xi32>
    %16 = arith.select %13, %15, %4 : vector<1x8x1024xi1>, vector<1x8x1024xi32>
    %c1_i32_3 = arith.constant 1 : i32
    %17 = vector.broadcast %c1_i32_3 : i32 to vector<1x8x1024xi32>
    %18 = arith.cmpi sge, %16, %17 : vector<1x8x1024xi32>
    %c0 = arith.constant 0 : index
    %c0_4 = arith.constant 0 : index
    %c0_5 = arith.constant 0 : index
    %19 = vector.load %arg1[%c0, %c0_4, %c0_5] : memref<1x8x1090xf32, #tpu.memory_space<vmem>>, vector<1x8x1024xf32>
    %cst = arith.constant 0.000000e+00 : f32
    %20 = vector.broadcast %cst : f32 to vector<1x8x1024xf32>
    %21 = arith.select %18, %19, %20 : vector<1x8x1024xi1>, vector<1x8x1024xf32>
    %c0_6 = arith.constant 0 : index
    %c0_7 = arith.constant 0 : index
    %c0_8 = arith.constant 0 : index
    %22 = vector.load %arg5[%c0_6, %c0_7, %c0_8] : memref<1x72x1024xf32, #tpu.memory_space<vmem>>, vector<1x8x1024xf32>
    tpu.vector_store %arg5[%c0_6, %c0_7, %c0_8], %21 {strides = array<i32>} : memref<1x72x1024xf32, #tpu.memory_space<vmem>>, vector<1x8x1024xf32>,
    %c0_9 = arith.constant 0 : index
    %c0_10 = arith.constant 0 : index
    %c32 = arith.constant 32 : index
    %23 = vector.load %arg1[%c0_9, %c0_10, %c32] : memref<1x8x1090xf32, #tpu.memory_space<vmem>>, vector<1x8x1024xf32>
    %cst_11 = arith.constant 0.000000e+00 : f32
    %24 = vector.broadcast %cst_11 : f32 to vector<1x8x1024xf32>
    %25 = arith.select %18, %23, %24 : vector<1x8x1024xi1>, vector<1x8x1024xf32>
    %c0_12 = arith.constant 0 : index
    %c24 = arith.constant 24 : index
    %c0_13 = arith.constant 0 : index
    %26 = vector.load %arg5[%c0_12, %c24, %c0_13] : memref<1x72x1024xf32, #tpu.memory_space<vmem>>, vector<1x8x1024xf32>
    tpu.vector_store %arg5[%c0_12, %c24, %c0_13], %25 {strides = array<i32>} : memref<1x72x1024xf32, #tpu.memory_space<vmem>>, vector<1x8x1024xf32>,
    %c0_14 = arith.constant 0 : index
    %c0_15 = arith.constant 0 : index
    %c64 = arith.constant 64 : index
    %27 = vector.load %arg1[%c0_14, %c0_15, %c64] : memref<1x8x1090xf32, #tpu.memory_space<vmem>>, vector<1x8x1024xf32>
    %cst_16 = arith.constant 0.000000e+00 : f32
    %28 = vector.broadcast %cst_16 : f32 to vector<1x8x1024xf32>
    %29 = arith.select %18, %27, %28 : vector<1x8x1024xi1>, vector<1x8x1024xf32>
    %c0_17 = arith.constant 0 : index
    %c48 = arith.constant 48 : index
    %c0_18 = arith.constant 0 : index
    %30 = vector.load %arg5[%c0_17, %c48, %c0_18] : memref<1x72x1024xf32, #tpu.memory_space<vmem>>, vector<1x8x1024xf32>
    tpu.vector_store %arg5[%c0_17, %c48, %c0_18], %29 {strides = array<i32>} : memref<1x72x1024xf32, #tpu.memory_space<vmem>>, vector<1x8x1024xf32>,
    %c0_19 = arith.constant 0 : index
    %c0_20 = arith.constant 0 : index
    %c1 = arith.constant 1 : index
    %31 = vector.load %arg1[%c0_19, %c0_20, %c1] : memref<1x8x1090xf32, #tpu.memory_space<vmem>>, vector<1x8x1024xf32>
    %c0_21 = arith.constant 0 : index
    %c8 = arith.constant 8 : index
    %c0_22 = arith.constant 0 : index
    %32 = vector.load %arg5[%c0_21, %c8, %c0_22] : memref<1x72x1024xf32, #tpu.memory_space<vmem>>, vector<1x8x1024xf32>
    tpu.vector_store %arg5[%c0_21, %c8, %c0_22], %31 {strides = array<i32>} : memref<1x72x1024xf32, #tpu.memory_space<vmem>>, vector<1x8x1024xf32>,
    %c0_23 = arith.constant 0 : index
    %c0_24 = arith.constant 0 : index
    %c33 = arith.constant 33 : index
    %33 = vector.load %arg1[%c0_23, %c0_24, %c33] : memref<1x8x1090xf32, #tpu.memory_space<vmem>>, vector<1x8x1024xf32>
    %c0_25 = arith.constant 0 : index
    %c32_26 = arith.constant 32 : index
    %c0_27 = arith.constant 0 : index
    %34 = vector.load %arg5[%c0_25, %c32_26, %c0_27] : memref<1x72x1024xf32, #tpu.memory_space<vmem>>, vector<1x8x1024xf32>
    tpu.vector_store %arg5[%c0_25, %c32_26, %c0_27], %33 {strides = array<i32>} : memref<1x72x1024xf32, #tpu.memory_space<vmem>>, vector<1x8x1024xf32>,
    %c0_28 = arith.constant 0 : index
    %c0_29 = arith.constant 0 : index
    %c65 = arith.constant 65 : index
    %35 = vector.load %arg1[%c0_28, %c0_29, %c65] : memref<1x8x1090xf32, #tpu.memory_space<vmem>>, vector<1x8x1024xf32>
    %c0_30 = arith.constant 0 : index
    %c56 = arith.constant 56 : index
    %c0_31 = arith.constant 0 : index
    %36 = vector.load %arg5[%c0_30, %c56, %c0_31] : memref<1x72x1024xf32, #tpu.memory_space<vmem>>, vector<1x8x1024xf32>
    tpu.vector_store %arg5[%c0_30, %c56, %c0_31], %35 {strides = array<i32>} : memref<1x72x1024xf32, #tpu.memory_space<vmem>>, vector<1x8x1024xf32>,
    %c31_i32 = arith.constant 31 : i32
    %37 = vector.broadcast %c31_i32 : i32 to vector<1x8x1024xi32>
    %38 = arith.cmpi slt, %16, %37 : vector<1x8x1024xi32>
    %c0_32 = arith.constant 0 : index
    %c0_33 = arith.constant 0 : index
    %c2 = arith.constant 2 : index
    %39 = vector.load %arg1[%c0_32, %c0_33, %c2] : memref<1x8x1090xf32, #tpu.memory_space<vmem>>, vector<1x8x1024xf32>
    %cst_34 = arith.constant 0.000000e+00 : f32
    %40 = vector.broadcast %cst_34 : f32 to vector<1x8x1024xf32>
    %41 = arith.select %38, %39, %40 : vector<1x8x1024xi1>, vector<1x8x1024xf32>
    %c0_35 = arith.constant 0 : index
    %c16 = arith.constant 16 : index
    %c0_36 = arith.constant 0 : index
    %42 = vector.load %arg5[%c0_35, %c16, %c0_36] : memref<1x72x1024xf32, #tpu.memory_space<vmem>>, vector<1x8x1024xf32>
    tpu.vector_store %arg5[%c0_35, %c16, %c0_36], %41 {strides = array<i32>} : memref<1x72x1024xf32, #tpu.memory_space<vmem>>, vector<1x8x1024xf32>,
    %c0_37 = arith.constant 0 : index
    %c0_38 = arith.constant 0 : index
    %c34 = arith.constant 34 : index
    %43 = vector.load %arg1[%c0_37, %c0_38, %c34] : memref<1x8x1090xf32, #tpu.memory_space<vmem>>, vector<1x8x1024xf32>
    %cst_39 = arith.constant 0.000000e+00 : f32
    %44 = vector.broadcast %cst_39 : f32 to vector<1x8x1024xf32>
    %45 = arith.select %38, %43, %44 : vector<1x8x1024xi1>, vector<1x8x1024xf32>
    %c0_40 = arith.constant 0 : index
    %c40 = arith.constant 40 : index
    %c0_41 = arith.constant 0 : index
    %46 = vector.load %arg5[%c0_40, %c40, %c0_41] : memref<1x72x1024xf32, #tpu.memory_space<vmem>>, vector<1x8x1024xf32>
    tpu.vector_store %arg5[%c0_40, %c40, %c0_41], %45 {strides = array<i32>} : memref<1x72x1024xf32, #tpu.memory_space<vmem>>, vector<1x8x1024xf32>,
    %c0_42 = arith.constant 0 : index
    %c0_43 = arith.constant 0 : index
    %c66 = arith.constant 66 : index
    %47 = vector.load %arg1[%c0_42, %c0_43, %c66] : memref<1x8x1090xf32, #tpu.memory_space<vmem>>, vector<1x8x1024xf32>
    %cst_44 = arith.constant 0.000000e+00 : f32
    %48 = vector.broadcast %cst_44 : f32 to vector<1x8x1024xf32>
    %49 = arith.select %38, %47, %48 : vector<1x8x1024xi1>, vector<1x8x1024xf32>
    %c0_45 = arith.constant 0 : index
    %c64_46 = arith.constant 64 : index
    %c0_47 = arith.constant 0 : index
    %50 = vector.load %arg5[%c0_45, %c64_46, %c0_47] : memref<1x72x1024xf32, #tpu.memory_space<vmem>>, vector<1x8x1024xf32>
    tpu.vector_store %arg5[%c0_45, %c64_46, %c0_47], %49 {strides = array<i32>} : memref<1x72x1024xf32, #tpu.memory_space<vmem>>, vector<1x8x1024xf32>,
    %c0_48 = arith.constant 0 : index
    %c0_49 = arith.constant 0 : index
    %51 = vector.load %arg2[%c0_48, %c0_49] : memref<8x72xf32, #tpu.memory_space<vmem>>, vector<8x72xf32>
    %c0_50 = arith.constant 0 : index
    %c0_51 = arith.constant 0 : index
    %52 = vector.load %arg3[%c0_50, %c0_51] : memref<8x1xf32, #tpu.memory_space<vmem>>, vector<8x1xf32>
    %c0_52 = arith.constant 0 : index
    %c0_53 = arith.constant 0 : index
    %c0_54 = arith.constant 0 : index
    %53 = vector.load %arg5[%c0_52, %c0_53, %c0_54] : memref<1x72x1024xf32, #tpu.memory_space<vmem>>, vector<1x72x1024xf32>
    %54 = vector.shape_cast %53 : vector<1x72x1024xf32> to vector<72x1024xf32>
    %cst_55 = arith.constant dense<0.000000e+00> : vector<8x1024xf32>
    %55 = tpu.matmul %51, %54, %cst_55 {dimension_numbers = #tpu.dot_dimension_numbers<[1], [0], [0], [1], [0, 0, 1, 1], [], []>} : vector<8x72xf32>, vector<72x1024xf32>, vector<8x1024xf32> -> vector<8x1024xf32>
    %56 = vector.broadcast %52 : vector<8x1xf32> to vector<8x1024xf32>
    %57 = arith.addf %55, %56 : vector<8x1024xf32>
    %c0_56 = arith.constant 0 : index
    %c0_57 = arith.constant 0 : index
    %c0_58 = arith.constant 0 : index
    %58 = vector.load %arg4[%c0_56, %c0_57, %c0_58] : memref<1x8x1024xf32, #tpu.memory_space<vmem>>, vector<1x8x1024xf32>
    %59 = vector.shape_cast %58 : vector<1x8x1024xf32> to vector<8x1024xf32>
    %60 = vector.shape_cast %57 : vector<8x1024xf32> to vector<1x8x1024xf32>
    tpu.vector_store %arg4[%c0_56, %c0_57, %c0_58], %60 {strides = array<i32>} : memref<1x8x1024xf32, #tpu.memory_space<vmem>>, vector<1x8x1024xf32>,
    return
  }
  func.func @transform_0(%arg0: i32) -> (i32, i32, i32) {
    %c0_i32 = arith.constant 0 : i32
    %c0_i32_0 = arith.constant 0 : i32
    %c0_i32_1 = arith.constant 0 : i32
    return %arg0, %c0_i32, %c0_i32_0 : i32, i32, i32
  }
  func.func @transform_1(%arg0: i32) -> (i32, i32) {
    %c0_i32 = arith.constant 0 : i32
    %c0_i32_0 = arith.constant 0 : i32
    %c0_i32_1 = arith.constant 0 : i32
    return %c0_i32, %c0_i32_0 : i32, i32
  }
  func.func @transform_2(%arg0: i32) -> (i32, i32) {
    %c0_i32 = arith.constant 0 : i32
    %c0_i32_0 = arith.constant 0 : i32
    %c0_i32_1 = arith.constant 0 : i32
    return %c0_i32, %c0_i32_0 : i32, i32
  }
  func.func @transform_3(%arg0: i32) -> (i32, i32, i32) {
    %c0_i32 = arith.constant 0 : i32
    %c0_i32_0 = arith.constant 0 : i32
    %c0_i32_1 = arith.constant 0 : i32
    return %arg0, %c0_i32, %c0_i32_0 : i32, i32, i32
  }
}

</mosaic_0001>

<bundles_post_ra>
// kernel: shuffle_conv_forward.2
= control target key start
LH: loop header
LB: loop body
LE: loop exit
PB: predicated region body
PF: predicated region fallthrough
CT: control target
= control target key end

     0   :  { %s1810_s17 = smov 0   ;;  %s2374_s0 = inlined_call_operand.vmem [shape: f32[8,72], index: 0, kind: input, shape index: {}]   ;;  %s2375_s1 = inlined_call_operand.vmem [shape: f32[8,1], index: 1, kind: input, shape index: {}]   ;;  %s2376_s2 = inlined_call_operand.vmem [shape: f32[2,4,1024], index: 2, kind: input, shape index: {}]   ;;  %s2377_s3 = inlined_call_operand.<no memory space> [shape: f32[], index: 3, kind: input, shape index: {}]   ;;  %s2378_s4 = inlined_call_operand.vmem [shape: f32[2,8,1024], index: 4, kind: output, shape index: {}]  }
   0x1   :  { %v1808_v0 = vstv %s2377_s3 }
   0x2 LB: > { %s1428_s18 = sadd.s32 4294967295, %s1766_s17   ;;  %p1432_p0 = scmp.ge.s32.totalorder %s1766_s17, 1  ;;  %s1766_s17 = sphi %s1810_s17, %s15_s17  }
   0x3   : > { %p140_p1 = scmp.lt.s32.totalorder %s1766_s17, 3 }
   0x5   : > { %p141_p2 = pnand %p1432_p0, %p140_p1 }
   0x6   : > { %p165_p3 = scmp.lt.s32.totalorder (!%p141_p2), %s1428_s18, 1  ;;  %v178_v1 = vlaneseq (!%p141_p2)  ;;  %s1768_s22 = smov (!%p141_p2), 33   ;;  %v1776_v41 = vmov (!%p141_p2), 0.0   ;;  %v1778_v45 = vmov (!%p141_p2), 0   ;;  %v986_v46 = vld [vmem:[%s2375_s1] sm:$0xff] (!%p141_p2)  ;;  %vm2379_vm3 = vcmask (!%p141_p2), 1039360  }
   0x7   : > { %144 = sbr.rel (%p141_p2) target bundleno = 560 (0x230), region = 32  ;;  %s1769_s23 = smov (!%p141_p2), 127   ;;  %1132 = vmatprep.mubr.f32.mxu0 (!%p141_p2), %v1776_v41  ;;  %1203 = vmatprep.mubr.f32.mxu1 (!%p141_p2), %v1776_v41  ;;  %vm2380_vm6 = vmmov (!%p141_p2), 1   ;;  %vm2382_vm11 = vcmask (!%p141_p2), 785408   ;;  %vm2383_vm13 = vcmask (!%p141_p2), 1031168  }
   0x8   : > { %v179_v2 = vshrl.u32 (!%p141_p2), %v178_v1, 7  ;;  %v1820_v3 = vand.u32 (!%p141_p2), 127, %v178_v1  ;;  %s1770_s24 = smov (!%p141_p2), 96   ;;  %s1771_s25 = smov (!%p141_p2), 126   ;;  %1758 = vset.pattern.permute.xlu1 (!%p141_p2), %v1778_v45  ;;  %1759 = vset.pattern.permute.xlu0 (!%p141_p2), %v1778_v45 }
   0x9   : > { %s1772_s26 = smov (!%p141_p2), 95   ;;  %s1773_s27 = smov (!%p141_p2), 94  }
   0xa   : > { %vm181_vm0 = vcmp.lt.s32.totalorder (!%p141_p2), %v179_v2, 4  ;;  %vm185_vm1 = vcmp.lt.s32.totalorder (!%p141_p2), %v1820_v3, 95  ;;  %s1774_s28 = smov (!%p141_p2), 64   ;;  %s1775_s29 = smov (!%p141_p2), 63   ;;  %v314_v47 = vadd.s32 (!%p141_p2), 128, %v1820_v3  ;;  %v316_v48 = vadd.s32 (!%p141_p2), 384, %v1820_v3 }
   0xb   : > { %s1777_s30 = smov (!%p141_p2), 62   ;;  %v315_v49 = vadd.s32 (!%p141_p2), 256, %v1820_v3  ;;  %v325_v60 = vand.u32 (!%p141_p2), 31, %v1820_v3 }
   0xc   : > { %v332_v50 = vand.u32 (!%p141_p2), 31, %v314_v47  ;;  %v346_v51 = vand.u32 (!%p141_p2), 31, %v316_v48 }
   0xd   : > { %v339_v52 = vand.u32 (!%p141_p2), 31, %v315_v49  ;;  %vm1990_vm10 = vcmp.ge.s32.totalorder (!%p141_p2), %v325_v60, 1 }
   0xe   : > { %s2488_s18 = smov (!%p165_p3, %s1428_s18), 1  ;;  %vm1942_vm2 = vcmp.ge.s32.totalorder %v332_v50, 1  ;;  %vm1948_vm4 = vcmp.ge.s32.totalorder %v346_v51, 1  ;;  %vm2001_vm12 = vcmp.lt.s32.totalorder %v332_v50, 31  ;;  %vm2009_vm14 = vmpackc.low %vm2380_vm6, %vm1990_vm10 }
   0xf   : > { %s1452_s3 = sshll.u32 %s2488_s18, 5  ;;  %vm1954_vm5 = vcmp.ge.s32.totalorder %v339_v52, 1  ;;  %vm1962_vm7 = vmpackc.low %vm2380_vm6, %vm1942_vm2  ;;  %s1453_s9 = sshll.u32 %s2488_s18, 6 }
  0x10   : > { %s1393_s21 = scalar_lea.vmem %s2376_s2, %s1452_s3  ;;  %vm1972_vm8 = vmpackc.low %vm2380_vm6, %vm1948_vm4  ;;  %s175_s12 = scalar_lea.vmem %s2378_s4, %s1453_s9 }
  0x11   : > { %v1440_v4 = vld [vmem:[%s1393_s21 + $0x8] sm:$0xf]  ;;  %v1441_v5 = vld [vmem:[%s1393_s21 + $0xc] sm:$0xf]  ;;  %v1438_v6 = vld [vmem:[%s1393_s21] sm:$0xf] }
  0x12   : > { %v213_v7 = vsel %vm181_vm0, %v1440_v4, %v1808_v0  ;;  %v229_v8 = vsel %vm181_vm0, %v1441_v5, %v1808_v0  ;;  %v182_v9 = vsel %vm181_vm0, %v1438_v6, %v1808_v0  ;;  %v1439_v10 = vld [vmem:[%s1393_s21 + $0x4] sm:$0xf]  ;;  %v1442_v11 = vld [vmem:[%s1393_s21 + $0x10] sm:$0xf]  ;;  %v1443_v15 = vld [vmem:[%s1393_s21 + $0x14] sm:$0xf] }
  0x13   : > { %v233_v12 = vsel %vm185_vm1, %v229_v8, %v213_v7  ;;  %v197_v13 = vsel %vm181_vm0, %v1439_v10, %v1808_v0  ;;  %v245_v14 = vsel %vm181_vm0, %v1442_v11, %v1808_v0  ;;  %v261_v19 = vsel %vm181_vm0, %v1443_v15, %v1808_v0  ;;  %v1445_v20 = vld [vmem:[%s1393_s21 + $0x1c] sm:$0xf]  ;;  %v1444_v21 = vld [vmem:[%s1393_s21 + $0x18] sm:$0xf]  ;;  %vm1982_vm9 = vmpackc.low %vm2380_vm6, %vm1954_vm5 }
  0x14   : > { %234 = vrot.lane.b32.xlu1 %v233_v12, %s1768_s22  ;;  %v201_v16 = vsel %vm185_vm1, %v197_v13, %v182_v9  ;;  %v249_v17 = vsel %vm185_vm1, %v245_v14, %v229_v8  ;;  %v217_v18 = vsel %vm185_vm1, %v213_v7, %v197_v13  ;;  %v265_v22 = vsel %vm185_vm1, %v261_v19, %v245_v14  ;;  %vm1509_vm15 = vmpackc.low %vm1942_vm2, %vm2001_vm12 }
  0x15   : > { %202 = vrot.lane.b32.xlu0 %v201_v16, %s1768_s22  ;;  %v186_v23 = vsel %vm185_vm1, %v182_v9, %v1808_v0  ;;  %v293_v24 = vsel %vm181_vm0, %v1445_v20, %v1808_v0  ;;  %v277_v25 = vsel %vm181_vm0, %v1444_v21, %v1808_v0  ;;  %vm2028_vm0 = vcmp.lt.s32.totalorder %v346_v51, 31 }
  0x16   : > { %v297_v26 = vsel %vm185_vm1, %v293_v24, %v277_v25  ;;  %v281_v27 = vsel %vm185_vm1, %v277_v25, %v261_v19  ;;  %v306_v28 = vsel %vm185_vm1, %v1808_v0, %v293_v24  ;;  %vm2036_vm1 = vcmp.lt.s32.totalorder %v339_v52, 31  ;;  %vm1533_vm2 = vmpackc.low %vm1948_vm4, %vm2028_vm0 }
  0x17   : > { %vm1536_vm4 = vmpackc.low %vm1954_vm5, %vm2036_vm1  ;;  %vm2389_vm6 = vcmask 769024  }
  0x18   : > { %250 = vrot.lane.b32.xlu1 %v249_v17, %s1768_s22 }
  0x19   : > { %218 = vrot.lane.b32.xlu0 %v217_v18, %s1768_s22 }
  0x1c   : > { %266 = vrot.lane.b32.xlu1 %v265_v22, %s1768_s22 }
  0x1d   : > { %187 = vrot.lane.b32.xlu0 %v186_v23, %s1768_s22 }
  0x20   : > { %298 = vrot.lane.b32.xlu1 %v297_v26, %s1768_s22 }
  0x21   : > { %282 = vrot.lane.b32.xlu0 %v281_v27, %s1768_s22 }
  0x25   : > { %307 = vrot.lane.b32.xlu0 %v306_v28, %s1768_s22 }
  0x86   : > { %v1863_v29 = vpop.permute.xlu1 %234 }
  0x87   : > { %v1865_v30 = vpop.permute.xlu0 %202 }
  0x8a   : > { %v1867_v31 = vpop.permute.xlu1 %250 }
  0x8b   : > { %v1869_v32 = vpop.permute.xlu0 %218  ;;  %v1623_v33 = vpack.i.bf16 %v1867_v31, %v1863_v29 }
  0x8c   : > { %v1618_v34 = vpack.i.bf16 %v1869_v32, %v1865_v30 }
  0x8d   : > { %1624 = vrot.lane.b32.xlu0 %v1623_v33, %s1769_s23 }
  0x8e   : > { %1619 = vrot.lane.b32.xlu1 %v1618_v34, %s1769_s23  ;;  %v1877_v35 = vpop.permute.xlu1 %266 }
  0x8f   : > { %v1879_v36 = vpop.permute.xlu0 %187 }
  0x90   : > { %v1628_v37 = vpack.i.bf16 %v1877_v35, %v1879_v36 }
  0x91   : > { %1634 = vrot.lane.b32.xlu0 %v1618_v34, %s1770_s24 }
  0x92   : > { %1629 = vrot.lane.b32.xlu1 %v1628_v37, %s1769_s23  ;;  %v1899_v38 = vpop.permute.xlu1 %298 }
  0x93   : > { %v1901_v39 = vpop.permute.xlu0 %282 }
  0x94   : > { %v1718_v40 = vpack.i.bf16 %v1899_v38, %v1901_v39  ;;  %v1748_v44 = vpack.i.bf16 %v1901_v39, %v1877_v35 }
  0x95   : > { %1644 = vrot.lane.b32.xlu0 %v1618_v34, %s1771_s25 }
  0x96   : > { %1639 = vrot.lane.b32.xlu1 %v1623_v33, %s1770_s24 }
  0x97   : > { %v308_v42 = vpop.permute.xlu0 %307 }
  0x98   : > { %v1753_v43 = vpack.i.bf16 %v308_v42, %v1899_v38 }
  0x99   : > { %1654 = vrot.lane.b32.xlu0 %v1628_v37, %s1770_s24 }
  0x9a   : > { %1649 = vrot.lane.b32.xlu1 %v1623_v33, %s1771_s25 }
  0x9d   : > { %1664 = vrot.lane.b32.xlu0 %v1618_v34, %s1772_s26 }
  0x9e   : > { %1659 = vrot.lane.b32.xlu1 %v1628_v37, %s1771_s25 }
  0xa1   : > { %1674 = vrot.lane.b32.xlu0 %v1618_v34, %s1773_s27 }
  0xa2   : > { %1669 = vrot.lane.b32.xlu1 %v1623_v33, %s1772_s26 }
  0xa5   : > { %1684 = vrot.lane.b32.xlu0 %v1628_v37, %s1772_s26 }
  0xa6   : > { %1679 = vrot.lane.b32.xlu1 %v1623_v33, %s1773_s27 }
  0xa9   : > { %1694 = vrot.lane.b32.xlu0 %v1618_v34, %s1774_s28 }
  0xaa   : > { %1689 = vrot.lane.b32.xlu1 %v1628_v37, %s1773_s27 }
  0xad   : > { %1704 = vrot.lane.b32.xlu0 %v1618_v34, %s1775_s29 }
  0xae   : > { %1699 = vrot.lane.b32.xlu1 %v1623_v33, %s1774_s28 }
  0xb1   : > { %1714 = vrot.lane.b32.xlu0 %v1628_v37, %s1774_s28 }
  0xb2   : > { %1709 = vrot.lane.b32.xlu1 %v1623_v33, %s1775_s29 }
  0xb5   : > { %1719 = vrot.lane.b32.xlu0 %v1718_v40, %s1769_s23 }
  0xb6   : > { %727 = vrot.lane.b32.xlu1 %v1879_v36, %s1775_s29 }
  0xb9   : > { %936 = vrot.lane.b32.xlu0 %v1865_v30, %s1777_s30 }
  0xba   : > { %621 = vrot.lane.b32.xlu1 %v308_v42, %s1769_s23 }
  0xbd   : > { %940 = vrot.lane.b32.xlu0 %v1863_v29, %s1777_s30 }
  0xbe   : > { %938 = vrot.lane.b32.xlu1 %v1869_v32, %s1777_s30 }
  0xc1   : > { %934 = vrot.lane.b32.xlu0 %v1879_v36, %s1777_s30 }
  0xc2   : > { %942 = vrot.lane.b32.xlu1 %v1867_v31, %s1777_s30 }
  0xc5   : > { %483 = vrot.lane.b32.xlu0 %v308_v42, %s1770_s24 }
  0xc6   : > { %1724 = vrot.lane.b32.xlu1 %v1718_v40, %s1770_s24 }
  0xc9   : > { %812 = vrot.lane.b32.xlu0 %v308_v42, %s1771_s25 }
  0xca   : > { %1729 = vrot.lane.b32.xlu1 %v1718_v40, %s1771_s25 }
  0xcd   : > { %682 = vrot.lane.b32.xlu0 %v308_v42, %s1772_s26 }
  0xce   : > { %1734 = vrot.lane.b32.xlu1 %v1718_v40, %s1772_s26 }
  0xd1   : > { %881 = vrot.lane.b32.xlu0 %v308_v42, %s1773_s27 }
  0xd2   : > { %1739 = vrot.lane.b32.xlu1 %v1718_v40, %s1773_s27 }
  0xd5   : > { %552 = vrot.lane.b32.xlu0 %v308_v42, %s1774_s28 }
  0xd6   : > { %1744 = vrot.lane.b32.xlu1 %v1718_v40, %s1774_s28 }
  0xd9   : > { %1754 = vrot.lane.b32.xlu0 %v1753_v43, %s1775_s29 }
  0xda   : > { %1749 = vrot.lane.b32.xlu1 %v1748_v44, %s1775_s29 }
  0xdd   : > { %946 = vrot.lane.b32.xlu0 %v1901_v39, %s1777_s30 }
  0xde   : > { %944 = vrot.lane.b32.xlu1 %v1877_v35, %s1777_s30 }
  0xe1   : > { %950 = vrot.lane.b32.xlu0 %v308_v42, %s1777_s30 }
  0xe2   : > { %948 = vrot.lane.b32.xlu1 %v1899_v38, %s1777_s30 }
  0xe6   : > { %1061 = vperm.xlu1 %1758, %v986_v46  }
  0xff   : > { %v1946_v54 = vpop.permute.xlu0 %1624 }
 0x100   : > { %v1620_v56 = vpop.permute.xlu1 %1619  ;;  %v1627_v57 = vunpack.i.h.bf16 %v1946_v54  ;;  %v1626_v58 = vunpack.i.l.bf16 %v1946_v54  ;;  %v2181_v54 = vld [vmem:[%s2374_s0] sm:$0xff] }
 0x101   : > { %v1622_v61 = vunpack.i.h.bf16 %v1620_v56  ;;  %v1621_v62 = vunpack.i.l.bf16 %v1620_v56 }
 0x102   : > { %v627_v1 = vsel %vm2379_vm3, %v1626_v58, %v1627_v57 }
 0x103   : > { %v1635_v4 = vpop.permute.xlu0 %1634  ;;  %v625_v5 = vsel %vm2379_vm3, %v1621_v62, %v1622_v61  ;;  %v1526_v6 = vpack.c.bf16 %v627_v1, %v1863_v29  ;;  %v626_v7 = vsel %vm2379_vm3, %v1622_v61, %v1626_v58 }
 0x104   : > { %v1986_v9 = vpop.permute.xlu1 %1629  ;;  %v1502_v10 = vpack.c.bf16 %v625_v5, %v1865_v30  ;;  %v1529_v11 = vpack.c.bf16 %v626_v7, %v1869_v32  ;;  %v1637_v14 = vunpack.i.h.bf16 %v1635_v4  ;;  %v1636_v15 = vunpack.i.l.bf16 %v1635_v4 }
 0x105   : > { %v1631_v13 = vunpack.i.l.bf16 %v1986_v9  ;;  %1528 = vmatprep.subr.msk.bf16.mxu1 %vm1972_vm8, %v1526_v6  ;;  %v1632_v2 = vunpack.i.h.bf16 %v1986_v9 }
 0x106   : > { %1504 = vmatprep.subr.msk.bf16.mxu0 %vm1962_vm7, %v1502_v10  ;;  %1531 = vmatpush1.bf16.msk.msra.mxu1 %vm1982_vm9, %v1529_v11  ;;  %v487_v24 = vsel %vm2382_vm11, %v1636_v15, %v1637_v14 }
 0x107   : > { %v1645_v17 = vpop.permute.xlu0 %1644  ;;  %v624_v18 = vsel %vm2379_vm3, %v1631_v13, %v1621_v62  ;;  %vm2388_vm3 = vcmask 777216  }
 0x108   : > { %v2013_v20 = vpop.permute.xlu1 %1639  ;;  %v1647_v21 = vunpack.i.h.bf16 %v1645_v17  ;;  %v1646_v22 = vunpack.i.l.bf16 %v1645_v17  ;;  %v1505_v23 = vpack.c.bf16 %v624_v18, %v1879_v36 }
 0x109   : > { %v1641_v25 = vunpack.i.l.bf16 %v2013_v20  ;;  %v1642_v27 = vunpack.i.h.bf16 %v2013_v20 }
 0x10a   : > { %v816_v26 = vsel %vm2383_vm13, %v1646_v22, %v1647_v21  ;;  %1507 = vmatpush1.bf16.msk.msra.mxu0 %vm2009_vm14, %v1505_v23 }
 0x10b   : > { %v1508_v28 = vpack.c.bf16 %v487_v24, %v816_v26  ;;  %v2026_v29 = vpop.permute.xlu0 %1654  ;;  %v488_v37 = vsel %vm2382_vm11, %v1637_v14, %v1641_v25  ;;  %v489_v40 = vsel %vm2382_vm11, %v1641_v25, %v1642_v27 }
 0x10c   : > { %v2032_v32 = vpop.permute.xlu1 %1649  ;;  %v1656_v44 = vunpack.i.l.bf16 %v2026_v29 }
 0x10d   : > { %v1652_v33 = vunpack.i.h.bf16 %v2032_v32  ;;  %v1651_v34 = vunpack.i.l.bf16 %v2032_v32  ;;  %1510 = vmatprep.subr.msk.bf16.mxu0 %vm1509_vm15, %v1508_v28  ;;  %vm2059_vm15 = vcmp.lt.s32.totalorder %v325_v60, 31 }
 0x10e   : > { %v486_v53 = vsel %vm2382_vm11, %v1656_v44, %v1636_v15  ;;  %vm1512_vm5 = vmpackc.low %vm1990_vm10, %vm2059_vm15  ;;  %vm2384_vm11 = vcmask 515072  }
 0x10f   : > { %v817_v42 = vsel %vm2383_vm13, %v1647_v21, %v1651_v34  ;;  %v818_v43 = vsel %vm2383_vm13, %v1651_v34, %v1652_v33  ;;  %v1665_v45 = vpop.permute.xlu0 %1664 }
 0x110   : > { %v1532_v46 = vpack.c.bf16 %v489_v40, %v818_v43  ;;  %v1535_v47 = vpack.c.bf16 %v488_v37, %v817_v42  ;;  %v2053_v48 = vpop.permute.xlu1 %1659  ;;  %v1667_v51 = vunpack.i.h.bf16 %v1665_v45  ;;  %v1666_v52 = vunpack.i.l.bf16 %v1665_v45 }
 0x111   : > { %v1661_v50 = vunpack.i.l.bf16 %v2053_v48  ;;  %v1662_v36 = vunpack.i.h.bf16 %v2053_v48 }
 0x112   : > { %1534 = vmatprep.subr.msk.bf16.mxu1 %vm1533_vm2, %v1532_v46  ;;  %v686_v62 = vsel %vm2388_vm3, %v1666_v52, %v1667_v51  ;;  %vm2419_vm2 = vmmov 1  }
 0x113   : > { %v815_v55 = vsel %vm2383_vm13, %v1661_v50, %v1646_v22  ;;  %1537 = vmatpush1.bf16.msk.msra.mxu1 %vm1536_vm4, %v1535_v47  ;;  %v1675_v56 = vpop.permute.xlu0 %1674  ;;  %vm1515_vm4 = vmpackc.low %vm2001_vm12, %vm2419_vm2 }
 0x114   : > { %v1511_v58 = vpack.c.bf16 %v486_v53, %v815_v55  ;;  %v2070_v59 = vpop.permute.xlu1 %1669  ;;  %v1677_v60 = vunpack.i.h.bf16 %v1675_v56  ;;  %v1676_v61 = vunpack.i.l.bf16 %v1675_v56  ;;  %vm1539_vm10 = vmpackc.low %vm2028_vm0, %vm2419_vm2 }
 0x115   : > { %v1671_v1 = vunpack.i.l.bf16 %v2070_v59  ;;  %v1672_v5 = vunpack.i.h.bf16 %v2070_v59  ;;  %vm1518_vm13 = vmpackc.low %vm2059_vm15, %vm2419_vm2 }
 0x116   : > { %v885_v4 = vsel %vm2389_vm6, %v1676_v61, %v1677_v60  ;;  %1513 = vmatpush1.bf16.msk.msra.mxu0 %vm1512_vm5, %v1511_v58  ;;  %vm1542_vm5 = vmpackc.low %vm2036_vm1, %vm2419_vm2 }
 0x117   : > { %v1514_v6 = vpack.c.bf16 %v885_v4, %v686_v62  ;;  %v2079_v7 = vpop.permute.xlu0 %1684  ;;  %v687_v13 = vsel %vm2388_vm3, %v1667_v51, %v1671_v1  ;;  %v688_v14 = vsel %vm2388_vm3, %v1671_v1, %v1672_v5 }
 0x118   : > { %v2081_v10 = vpop.permute.xlu1 %1679  ;;  %v1686_v18 = vunpack.i.l.bf16 %v2079_v7 }
 0x119   : > { %v1682_v11 = vunpack.i.h.bf16 %v2081_v10  ;;  %v1681_v12 = vunpack.i.l.bf16 %v2081_v10  ;;  %1516 = vmatprep.subr.msk.bf16.mxu0 %vm1515_vm4, %v1514_v6  ;;  %vm2385_vm4 = vcmask 523264  }
 0x11a   : > { %v685_v34 = vsel %vm2388_vm3, %v1686_v18, %v1666_v52  ;;  %v2135_v18 = vadd.s32 512, %v1820_v3  ;;  %vm2448_vm3 = vcmask 1031168  }
 0x11b   : > { %v886_v15 = vsel %vm2389_vm6, %v1677_v60, %v1681_v12  ;;  %v887_v17 = vsel %vm2389_vm6, %v1681_v12, %v1682_v11  ;;  %v1695_v21 = vpop.permute.xlu0 %1694 }
 0x11c   : > { %v1538_v22 = vpack.c.bf16 %v887_v17, %v688_v14  ;;  %v1541_v23 = vpack.c.bf16 %v886_v15, %v687_v13  ;;  %v2097_v24 = vpop.permute.xlu1 %1689  ;;  %v1697_v26 = vunpack.i.h.bf16 %v1695_v21  ;;  %v1696_v28 = vunpack.i.l.bf16 %v1695_v21 }
 0x11d   : > { %v1691_v25 = vunpack.i.l.bf16 %v2097_v24  ;;  %v318_v15 = vadd.s32 640, %v1820_v3 }
 0x11e   : > { %1540 = vmatprep.subr.msk.bf16.mxu1 %vm1539_vm10, %v1538_v22  ;;  %v556_v46 = vsel %vm2385_vm4, %v1696_v28, %v1697_v26  ;;  %v320_v22 = vadd.s32 896, %v1820_v3 }
 0x11f   : > { %v884_v37 = vsel %vm2389_vm6, %v1691_v25, %v1676_v61  ;;  %1543 = vmatpush1.bf16.msk.msra.mxu1 %vm1542_vm5, %v1541_v23  ;;  %v1705_v40 = vpop.permute.xlu0 %1704  ;;  %vm2449_vm6 = vcmask 785408  }
 0x120   : > { %v1517_v42 = vpack.c.bf16 %v884_v37, %v685_v34  ;;  %v2108_v43 = vpop.permute.xlu1 %1699  ;;  %v1707_v44 = vunpack.i.h.bf16 %v1705_v40  ;;  %v1706_v45 = vunpack.i.l.bf16 %v1705_v40  ;;  %v353_v37 = vand.u32 31, %v2135_v18 }
 0x121   : > { %v1702_v50 = vunpack.i.h.bf16 %v2108_v43  ;;  %v1701_v51 = vunpack.i.l.bf16 %v2108_v43  ;;  %v374_v40 = vand.u32 31, %v320_v22 }
 0x122   : > { %v747_v47 = vsel %vm2384_vm11, %v1706_v45, %v1707_v44  ;;  %1519 = vmatpush1.bf16.msk.msra.mxu0 %vm1518_vm13, %v1517_v42  ;;  %vm2153_vm13 = vcmp.ge.s32.totalorder %v353_v37, 1 }
 0x123   : > { %v1520_v52 = vpack.c.bf16 %v747_v47, %v556_v46  ;;  %v2114_v53 = vpop.permute.xlu0 %1714  ;;  %v557_v61 = vsel %vm2385_vm4, %v1697_v26, %v1701_v51  ;;  %v558_v62 = vsel %vm2385_vm4, %v1701_v51, %v1702_v50  ;;  %v360_v26 = vand.u32 31, %v318_v15 }
 0x124   : > { %v2116_v55 = vpop.permute.xlu1 %1709  ;;  %v1716_v60 = vunpack.i.l.bf16 %v2114_v53 }
 0x125   : > { %v1712_v56 = vunpack.i.h.bf16 %v2116_v55  ;;  %v1711_v58 = vunpack.i.l.bf16 %v2116_v55  ;;  %1522 = vmatprep.subr.msk.bf16.mxu0 %vm1962_vm7, %v1520_v52  ;;  %vm2387_vm7 = vcmask 506880  }
 0x126   : > { %v555_v63 = vsel %vm2385_vm4, %v1716_v60, %v1696_v28  ;;  %v319_v28 = vadd.s32 768, %v1820_v3  ;;  %v2429_v60 = vmov 0 }
 0x127   : > { %v748_v1 = vsel %vm2384_vm11, %v1707_v44, %v1711_v58  ;;  %v749_v4 = vsel %vm2384_vm11, %v1711_v58, %v1712_v56  ;;  %v1720_v6 = vpop.permute.xlu0 %1719 }
 0x128   : > { %v1544_v12 = vpack.c.bf16 %v749_v4, %v558_v62  ;;  %v1547_v13 = vpack.c.bf16 %v748_v1, %v557_v61  ;;  %v728_v14 = vpop.permute.xlu1 %727  ;;  %v1721_v34 = vunpack.i.l.bf16 %v1720_v6  ;;  %v1722_v46 = vunpack.i.h.bf16 %v1720_v6 }
 0x129   : > { %v746_v17 = vsel %vm2384_vm11, %v728_v14, %v1706_v45  ;;  %v367_v45 = vand.u32 31, %v319_v28  ;;  %vm2435_vm11 = vcmask 1039360   ;;  %v2436_v6 = vmov 0 }
 0x12a   : > { %v1523_v21 = vpack.c.bf16 %v746_v17, %v555_v63  ;;  %1546 = vmatprep.subr.msk.bf16.mxu1 %vm1972_vm8, %v1544_v12  ;;  %vm2147_vm8 = vcmp.ge.s32.totalorder %v360_v26, 1 }
 0x12b   : > { %1549 = vmatpush1.bf16.msk.msra.mxu1 %vm1982_vm9, %v1547_v13  ;;  %v937_v23 = vpop.permute.xlu0 %936  ;;  %vm2422_vm9 = vcmask 1039360  }
 0x12c   : > { %v622_v25 = vpop.permute.xlu1 %621  ;;  %1525 = vmatpush1.bf16.msk.msra.mxu0 %vm2009_vm14, %v1523_v21  ;;  %v629_v19 = vsel %vm2422_vm9, %v1632_v2, %v1721_v34  ;;  %vm2159_vm14 = vcmp.ge.s32.totalorder %v374_v40, 1  ;;  %vm2427_vm10 = vmmov %vm2422_vm9  ;;  %v1657_v21 = vunpack.i.h.bf16 %v2026_v29  ;;  %v819_v29 = vsel %vm2448_vm3, %v1652_v33, %v1662_v36 }
 0x12d   : > { %v628_v51 = vsel %vm2427_vm10, %v1627_v57, %v1632_v2  ;;  %vm2428_vm5 = vmmov %vm2422_vm9  ;;  %v1550_v16 = vpack.c.bf16 %v629_v19, %v1877_v35  ;;  %v2431_v57 = vmov 0  ;;  %v630_v35 = vsel %vm2435_vm11, %v1721_v34, %v1722_v46 }
 0x12e   : > { %v631_v52 = vsel %vm2428_vm5, %v1722_v46, %v622_v25  ;;  %vm2170_vm9 = vmpackc.low %vm2419_vm2, %vm2147_vm8  ;;  %vm2190_vm5 = vcmp.ge.s32.totalorder %v367_v45, 1  ;;  %v1553_v12 = vpack.c.bf16 %v628_v51, %v1867_v31  ;;  %v2438_v31 = vmov 0 }
 0x12f   : > { %v941_v42 = vpop.permute.xlu0 %940  ;;  %v2430_v60 = vsel %vm2170_vm9, 4294967295, %v2429_v60  ;;  %vm2186_vm10 = vmpackc.low %vm2419_vm2, %vm2153_vm13  ;;  %v1574_v13 = vpack.c.bf16 %v631_v52, %v1899_v38  ;;  %v1577_v38 = vpack.c.bf16 %v630_v35, %v1901_v39  ;;  %v490_v33 = vsel %vm2449_vm6, %v1642_v27, %v1657_v21 }
 0x130   : > { %v939_v44 = vpop.permute.xlu1 %938  ;;  %v2432_v57 = vsel %vm2186_vm10, 4294967295, %v2431_v57  ;;  %vm2202_vm4 = vmpackc.low %vm2419_vm2, %vm2159_vm14  ;;  %v1559_v19 = vpack.c.bf16 %v490_v33, %v819_v29  ;;  %v1687_v27 = vunpack.i.h.bf16 %v2079_v7 }
 0x131   : > { %v954_v47 = vsel %vm2387_vm7, %v937_v23, %v939_v44  ;;  %v2437_v6 = vsel %vm2202_vm4, 4294967295, %v2436_v6  ;;  %v955_v14 = vsel %vm2387_vm7, %v939_v44, %v941_v42  ;;  %vm2220_vm11 = vmpackc.low %vm2419_vm2, %vm2190_vm5 }
 0x132   : > { %1464 = vmatprep.subr.msk.mxu0 %vm2001_vm12, %v954_v47  ;;  %vm2386_vm12 = vcmask 588800   ;;  %v2439_v31 = vsel %vm2220_vm11, 4294967295, %v2438_v31  ;;  %vm2454_vm2 = vmmov %vm2448_vm3  ;;  %v1692_v47 = vunpack.i.h.bf16 %v2097_v24 }
 0x133   : > { %v935_v58 = vpop.permute.xlu0 %934 }
 0x134   : > { %v2175_v61 = vpop.permute.xlu1 %942  ;;  %v953_v62 = vsel %vm2387_vm7, %v935_v58, %v937_v23 }
 0x135   : > { %v956_v4 = vsel %vm2387_vm7, %v941_v42, %v2175_v61  ;;  %1465 = vmatpush1.msk.msra.mxu0 %vm2059_vm15, %v953_v62  ;;  %vm2245_vm15 = vcmp.lt.s32.totalorder %v353_v37, 31  ;;  %vm2253_vm7 = vcmp.lt.s32.totalorder %v367_v45, 31 }
 0x136   : > { %1476 = vmatprep.subr.msk.mxu1 %vm2028_vm0, %v956_v4  ;;  %1552 = vmatprep.subr.msk.bf16.mxu0 %vm2170_vm9, %v1550_v16  ;;  %vm2235_vm0 = vcmp.lt.s32.totalorder %v360_v26, 31  ;;  %vm2451_vm9 = vmmov %vm2449_vm6 }
 0x137   : > { %1477 = vmatpush1.msk.msra.mxu1 %vm2036_vm1, %v955_v14  ;;  %v484_v49 = vpop.permute.xlu0 %483  ;;  %1446 = vmatmul.mubr.msk.f32.vlgmr.msra.gmra.mrb[0].mxu0 %vm2386_vm12, %v2181_v54  ;;  %vm2240_vm1 = vcmp.lt.s32.totalorder %v374_v40, 31 }
 0x138   : > { %v1725_v30 = vpop.permute.xlu1 %1724  ;;  %1555 = vmatpush1.bf16.msk.msra.mxu0 %vm2186_vm10, %v1553_v12  ;;  %1576 = vmatprep.subr.msk.bf16.mxu1 %vm2202_vm4, %v1574_v13  ;;  %vm2450_vm10 = vmmov %vm2449_vm6 }
 0x139   : > { %1447 = vmatmul.mubr.msk.f32.vlgmr.msra.gmra.mrb[0].mxu1 %vm2386_vm12, %v2181_v54  ;;  %1274 = vmatprep.mubr.f32.mxu0 %v1776_v41  ;;  %v1727_v15 = vunpack.i.h.bf16 %v1725_v30  ;;  %v1726_v63 = vunpack.i.l.bf16 %v1725_v30  ;;  %vm2452_vm12 = vmmov %vm2448_vm3 }
 0x13a   : > { %1579 = vmatpush1.bf16.msk.msra.mxu1 %vm2220_vm11, %v1577_v38  ;;  %1345 = vmatprep.mubr.f32.mxu1 %v1776_v41  ;;  %vm1581_vm11 = vmpackc.low %vm2159_vm14, %vm2240_vm1  ;;  %vm2460_vm14 = vcmask 777216  }
 0x13b   : > { %v813_v17 = vpop.permute.xlu0 %812  ;;  %v491_v26 = vsel %vm2449_vm6, %v1657_v21, %v1726_v63  ;;  %v492_v28 = vsel %vm2450_vm10, %v1726_v63, %v1727_v15  ;;  %v493_v34 = vsel %vm2451_vm9, %v1727_v15, %v484_v49  ;;  %vm2453_vm4 = vmmov %vm2448_vm3 }
 0x13c   : > { %v1730_v22 = vpop.permute.xlu1 %1729  ;;  %vm1560_vm3 = vmpackc.low %vm2153_vm13, %vm2245_vm15  ;;  %vm2456_vm13 = vmmov 1  }
 0x13d   : > { %v1732_v23 = vunpack.i.h.bf16 %v1730_v22  ;;  %v1731_v25 = vunpack.i.l.bf16 %v1730_v22  ;;  %vm2296_vm9 = vmpackc.low %vm2235_vm0, %vm2456_vm13 }
 0x13e   : > { %vm2308_vm10 = vmpackc.low %vm2240_vm1, %vm2456_vm13 }
 0x13f   : > { %v820_v37 = vsel %vm2452_vm12, %v1662_v36, %v1731_v25  ;;  %v821_v40 = vsel %vm2453_vm4, %v1731_v25, %v1732_v23  ;;  %v822_v2 = vsel %vm2454_vm2, %v1732_v23, %v813_v17  ;;  %v683_v32 = vpop.permute.xlu0 %682  ;;  %vm1584_vm4 = vmpackc.low %vm2190_vm5, %vm2253_vm7  ;;  %v1717_v36 = vunpack.i.h.bf16 %v2114_v53 }
 0x140   : > { %v1556_v42 = vpack.c.bf16 %v491_v26, %v820_v37  ;;  %v1583_v44 = vpack.c.bf16 %v492_v28, %v821_v40  ;;  %v1580_v45 = vpack.c.bf16 %v493_v34, %v822_v2  ;;  %v1735_v46 = vpop.permute.xlu1 %1734  ;;  %vm2455_vm2 = vmpackc.low %vm2147_vm8, %vm2235_vm0  ;;  %vm2459_vm8 = vcmask 769024  }
 0x141   : > { %v1737_v51 = vunpack.i.h.bf16 %v1735_v46  ;;  %v1736_v52 = vunpack.i.l.bf16 %v1735_v46  ;;  %v888_v9 = vsel %vm2459_vm8, %v1682_v11, %v1692_v47  ;;  %vm2461_vm12 = vmmov %vm2460_vm14 }
 0x142   : > { %1558 = vmatprep.subr.msk.bf16.mxu0 %vm2455_vm2, %v1556_v42  ;;  %1582 = vmatprep.subr.msk.bf16.mxu1 %vm1581_vm11, %v1580_v45  ;;  %vm2464_vm5 = vmmov %vm2461_vm12 }
 0x143   : > { %1561 = vmatpush1.bf16.msk.msra.mxu0 %vm1560_vm3, %v1559_v19  ;;  %1585 = vmatpush1.bf16.msk.msra.mxu1 %vm1584_vm4, %v1583_v44  ;;  %v882_v20 = vpop.permute.xlu0 %881  ;;  %v690_v16 = vsel %vm2460_vm14, %v1687_v27, %v1736_v52  ;;  %v691_v62 = vsel %vm2461_vm12, %v1736_v52, %v1737_v51  ;;  %v692_v1 = vsel %vm2464_vm5, %v1737_v51, %v683_v32  ;;  %vm2465_vm11 = vmmov %vm2459_vm8 }
 0x144   : > { %v1740_v24 = vpop.permute.xlu1 %1739  ;;  %vm2466_vm3 = vmmov %vm2459_vm8 }
 0x145   : > { %v1742_v3 = vunpack.i.h.bf16 %v1740_v24  ;;  %v1741_v58 = vunpack.i.l.bf16 %v1740_v24  ;;  %vm2467_vm6 = vmmov %vm2466_vm3 }
 0x146   : > { %vm1566_vm4 = vmpackc.low %vm2245_vm15, %vm2456_vm13 }
 0x147   : > { %v889_v35 = vsel %vm2465_vm11, %v1692_v47, %v1741_v58  ;;  %v890_v4 = vsel %vm2466_vm3, %v1741_v58, %v1742_v3  ;;  %v891_v10 = vsel %vm2467_vm6, %v1742_v3, %v882_v20  ;;  %v553_v11 = vpop.permute.xlu0 %552  ;;  %vm2468_vm2 = vmmov %vm2464_vm5  ;;  %vm2473_vm5 = vcmask 515072  }
 0x148   : > { %v689_v12 = vsel %vm2468_vm2, %v1672_v5, %v1687_v27  ;;  %v1562_v13 = vpack.c.bf16 %v889_v35, %v690_v16  ;;  %v1589_v14 = vpack.c.bf16 %v890_v4, %v691_v62  ;;  %v1586_v49 = vpack.c.bf16 %v891_v10, %v692_v1  ;;  %v1745_v38 = vpop.permute.xlu1 %1744  ;;  %vm1590_vm8 = vmpackc.low %vm2253_vm7, %vm2456_vm13 }
 0x149   : > { %v1565_v30 = vpack.c.bf16 %v888_v9, %v689_v12  ;;  %v1747_v15 = vunpack.i.h.bf16 %v1745_v38  ;;  %v1746_v63 = vunpack.i.l.bf16 %v1745_v38  ;;  %vm2469_vm13 = vcmask 523264   ;;  %vm2475_vm11 = vmmov %vm2473_vm5 }
 0x14a   : > { %1564 = vmatprep.subr.msk.bf16.mxu0 %vm2296_vm9, %v1562_v13  ;;  %1588 = vmatprep.subr.msk.bf16.mxu1 %vm2308_vm10, %v1586_v49  ;;  %v559_v22 = vsel %vm2469_vm13, %v1702_v50, %v1717_v36  ;;  %vm2470_vm14 = vmmov %vm2469_vm13  ;;  %vm2477_vm6 = vnez %v2437_v6  ;;  %vm2479_vm2 = vnez %v2439_v31 }
 0x14b   : > { %1567 = vmatpush1.bf16.msk.msra.mxu0 %vm1566_vm4, %v1565_v30  ;;  %1591 = vmatpush1.bf16.msk.msra.mxu1 %vm1590_vm8, %v1589_v14  ;;  %v1755_v59 = vpop.permute.xlu0 %1754  ;;  %v560_v25 = vsel %vm2470_vm14, %v1717_v36, %v1746_v63  ;;  %vm2471_vm12 = vmmov %vm2469_vm13  ;;  %vm2478_vm4 = vnez %v2430_v60  ;;  %vm2480_vm8 = vcmask 506880   ;;  %vm2481_vm13 = vnez %v2432_v57 }
 0x14c   : > { %v1750_v5 = vpop.permute.xlu1 %1749  ;;  %v1757_v17 = vunpack.i.h.bf16 %v1755_v59  ;;  %v1756_v21 = vunpack.i.l.bf16 %v1755_v59  ;;  %v561_v29 = vsel %vm2471_vm12, %v1746_v63, %v1747_v15  ;;  %vm2472_vm9 = vmmov %vm2471_vm12 }
 0x14d   : > { %v1752_v23 = vunpack.i.h.bf16 %v1750_v5  ;;  %v1751_v53 = vunpack.i.l.bf16 %v1750_v5  ;;  %v562_v26 = vsel %vm2472_vm9, %v1747_v15, %v553_v11  ;;  %vm2474_vm10 = vmmov %vm2473_vm5 }
 0x14e   : > { %v753_v28 = vsel %vm2473_vm5, %v1756_v21, %v1757_v17  ;;  %vm2476_vm3 = vmmov %vm2473_vm5  ;;  %vm2485_vm5 = vcmask 588800  }
 0x14f   : > { %v750_v34 = vsel %vm2474_vm10, %v1712_v56, %v1751_v53  ;;  %v751_v37 = vsel %vm2475_vm11, %v1751_v53, %v1752_v23  ;;  %v752_v43 = vsel %vm2476_vm3, %v1752_v23, %v1756_v21  ;;  %v1592_v40 = vpack.c.bf16 %v753_v28, %v562_v26  ;;  %v947_v50 = vpop.permute.xlu0 %946  ;;  %vm2482_vm14 = vmmov %vm2480_vm8 }
 0x150   : > { %v1568_v2 = vpack.c.bf16 %v751_v37, %v560_v25  ;;  %v1571_v32 = vpack.c.bf16 %v750_v34, %v559_v22  ;;  %v1595_v33 = vpack.c.bf16 %v752_v43, %v561_v29  ;;  %v945_v42 = vpop.permute.xlu1 %944  ;;  %vm2483_vm12 = vmmov %vm2480_vm8 }
 0x151   : > { %1594 = vmatprep.subr.msk.bf16.mxu1 %vm2477_vm6, %v1592_v40  ;;  %v958_v55 = vsel %vm2480_vm8, %v945_v42, %v947_v50  ;;  %vm2484_vm9 = vmmov %vm2480_vm8 }
 0x152   : > { %1570 = vmatprep.subr.msk.bf16.mxu0 %vm2478_vm4, %v1568_v2  ;;  %1597 = vmatpush1.bf16.msk.msra.mxu1 %vm2479_vm2, %v1595_v33  ;;  %v957_v60 = vsel %vm2484_vm9, %v2175_v61, %v945_v42 }
 0x153   : > { %1573 = vmatpush1.bf16.msk.msra.mxu0 %vm2481_vm13, %v1571_v32  ;;  %v951_v56 = vpop.permute.xlu0 %950 }
 0x154   : > { %v949_v44 = vpop.permute.xlu1 %948  ;;  %1488 = vmatprep.subr.msk.mxu0 %vm2235_vm0, %v958_v55  ;;  %vm2486_vm0 = vmmov %vm2485_vm5 }
 0x155   : > { %v959_v6 = vsel %vm2482_vm14, %v947_v50, %v949_v44  ;;  %v960_v45 = vsel %vm2483_vm12, %v949_v44, %v951_v56 }
 0x156   : > { %1500 = vmatprep.subr.msk.mxu1 %vm2240_vm1, %v960_v45 }
 0x157   : > { %1489 = vmatpush1.msk.msra.mxu0 %vm2245_vm15, %v957_v60  ;;  %1501 = vmatpush1.msk.msra.mxu1 %vm2253_vm7, %v959_v6 }
 0x158   : > { %1448 = vmatmul.mubr.msk.f32.vlgmr.msra.gmra.mrb[2].mxu0 %vm2485_vm5, %v2181_v54  ;;  %1449 = vmatmul.mubr.msk.f32.vlgmr.msra.gmra.mrb[2].mxu1 %vm2486_vm0, %v2181_v54 }
 0x165   : > { %v1062_v57 = vpop.permute.xlu1 %1061 }
 0x20a   : > { %v1134_v31 = vpop.f32.mrb[0].mxu0 }
 0x20b   : > { %v1135_v61 = vadd.f32 %v1134_v31, %v1062_v57  ;;  %v1136_v39 = vpop.f32.mrb[1].mxu0 }
 0x20c   : > { %v1205_v18 = vpop.f32.mrb[0].mxu1  ;;  %v1137_v48 = vadd.f32 %v1136_v39, %v1062_v57 }
 0x20d   : > { %v1206_v46 = vadd.f32 %v1205_v18, %v1062_v57  ;;  %1352 = vst [vmem:[%s175_s12] sm:$0xff] %v1135_v61  ;;  %v1207_v41 = vpop.f32.mrb[1].mxu1 }
 0x20e   : > { %1353 = vst [vmem:[%s175_s12 + $0x8] sm:$0xff] %v1137_v48  ;;  %v1208_v19 = vadd.f32 %v1207_v41, %v1062_v57 }
 0x20f   : > { %1354 = vst [vmem:[%s175_s12 + $0x10] sm:$0xff] %v1206_v46 }
 0x210   : > { %1355 = vst [vmem:[%s175_s12 + $0x18] sm:$0xff] %v1208_v19 }
 0x22b   : > { %v1276_v47 = vpop.f32.mrb[2].mxu0  ;;  %v1347_v54 = vpop.f32.mrb[2].mxu1 }
 0x22c   : > { %v1277_v51 = vadd.f32 %v1276_v47, %v1062_v57  ;;  %v1348_v52 = vadd.f32 %v1347_v54, %v1062_v57  ;;  %v1278_v20 = vpop.f32.mrb[3].mxu0  ;;  %v1349_v27 = vpop.f32.mrb[3].mxu1 }
 0x22d   : > { %v1279_v24 = vadd.f32 %v1278_v20, %v1062_v57  ;;  %v1350_v3 = vadd.f32 %v1349_v27, %v1062_v57 }
 0x22e   : > { %1356 = vst [vmem:[%s175_s12 + $0x20] sm:$0xff] %v1277_v51  ;;  %1358 = vst [vmem:[%s175_s12 + $0x30] sm:$0xff] %v1348_v52 }
 0x22f   : > { %1357 = vst [vmem:[%s175_s12 + $0x28] sm:$0xff] %v1279_v24  ;;  %1359 = vst [vmem:[%s175_s12 + $0x38] sm:$0xff] %v1350_v3 }
 0x230 PF: > { %s15_s17 = sadd.s32 1, %s1766_s17  }
 0x231   : > { %p12_p4 = scmp.ge.s32.totalorder %s15_s17, 4  }
 0x233   :  { %14 = sbr.rel (!%p12_p4) target bundleno = 2 (0x2), region = 78 }

</bundles_post_ra>
